<compile_context>
chip_gen: v5e
topology: v5e:2x2
jax: 0.10.0
libtpu: 0.0.40
codegen_flags: <defaults>
</compile_context>

<pallas_src>
import jax
import jax.numpy as jnp
from jax.experimental import pallas as pl
from jax.experimental.pallas import tpu as pltpu

_LANE = 128
_SUBLANE = 8


def _round_up(x, m):
    return ((x + m - 1) // m) * m


def _vmem_capacity_bytes():
    try:
        return int(pltpu.get_tpu_info().vmem_capacity_bytes)
    except Exception:
        return 64 << 20  # conservative per-core default (v7x)


def _supports_buffered():
    try:
        pl.BlockSpec((8, 128), lambda i: (0, 0), pipeline_mode=pl.Buffered(1))
        return True
    except Exception:
        return False


def _const_spec(shape, single_buffer):
    index_map = lambda i: (0,) * len(shape)
    if single_buffer:
        return pl.BlockSpec(shape, index_map, pipeline_mode=pl.Buffered(1))
    return pl.BlockSpec(shape, index_map)


def _choose_tile_b(b_pad8, max_tile):
    """Pick a batch tile (multiple of 8): balance batch-padding waste against
    per-grid-step overhead, and keep >= 2 grid steps so v7x's two TensorCores
    both get work (no effect on single-TC v5e/v6e)."""
    max_tile = max(_SUBLANE, (min(max_tile, b_pad8) // _SUBLANE) * _SUBLANE)
    if b_pad8 >= 2 * _SUBLANE:
        max_tile = min(max_tile, max(_SUBLANE, (b_pad8 // 2) // _SUBLANE * _SUBLANE))
    best_t, best_cost = _SUBLANE, None
    t = _SUBLANE
    while t <= max_tile:
        padded = _round_up(b_pad8, t)
        cost = padded + (padded // t) * 64  # traffic rows + per-step overhead proxy
        if best_cost is None or cost < best_cost:
            best_t, best_cost = t, cost
        t += _SUBLANE
    return best_t


def _masked_resblock_kernel(x_ref, w0_ref, b0_ref, w1_ref, b1_ref, o_ref):
    """One batch tile of the ResMADE block.

    x_ref / o_ref : [TILE_B, F]  io dtype
    w*_ref        : [F, F]       compute dtype (pre-masked, pre-transposed)
    b*_ref        : [1, F]       float32
    """
    x = x_ref[...].astype(jnp.float32)            # residual kept in f32
    h = jnp.maximum(x, 0.0)                       # activation (ReLU)

    # MaskedLinear 0 (weights already masked + transposed)
    h = jnp.dot(h.astype(w0_ref.dtype), w0_ref[...],
                preferred_element_type=jnp.float32) + b0_ref[...]

    h = jnp.maximum(h, 0.0)                       # activation; dropout(p=0) = identity
    # TODO(synk): training-mode dropout (p > 0) not implemented; module default p = 0.0.

    # MaskedLinear 1
    h = jnp.dot(h.astype(w1_ref.dtype), w1_ref[...],
                preferred_element_type=jnp.float32) + b1_ref[...]

    o_ref[...] = (x + h).astype(o_ref.dtype)      # residual add


def prepare_masked_residual_params(w0, b0, w1, b1, mask, *,
                                   compute_dtype=jnp.bfloat16):
    """Precompute (mask * W).T once per weight update (hoisted out of forward).

    w0/w1/mask: [out, in] (PyTorch layout); b0/b1: [F].
    Returns (w0t, b0p, w1t, b1p) ready to feed masked_residual_block().
    """
    m = jnp.asarray(mask, jnp.float32)
    w0t = (m * jnp.asarray(w0, jnp.float32)).T.astype(compute_dtype)
    w1t = (m * jnp.asarray(w1, jnp.float32)).T.astype(compute_dtype)
    b0p = jnp.asarray(b0, jnp.float32).reshape(1, -1)
    b1p = jnp.asarray(b1, jnp.float32).reshape(1, -1)
    return w0t, b0p, w1t, b1p


def masked_residual_block(x, w0t, b0, w1t, b1, *,
                          io_dtype=jnp.float32,
                          vmem_budget_bytes=None):
    """x: [B, F]; w0t/w1t: [F, F] pre-masked+transposed; b0/b1: [F] or [1, F]."""
    B, F = x.shape
    assert w0t.shape == (F, F) and w1t.shape == (F, F), (w0t.shape, w1t.shape)
    b0 = jnp.asarray(b0, jnp.float32).reshape(1, F)
    b1 = jnp.asarray(b1, jnp.float32).reshape(1, F)

    w_itemsize = jnp.dtype(w0t.dtype).itemsize
    io_itemsize = jnp.dtype(io_dtype).itemsize

    cap = _vmem_capacity_bytes()
    if vmem_budget_bytes is None:
        # Generation-aware budget: ~42 MiB on v7x (64 MiB VMEM), ~90 MiB on v5e/v6e.
        vmem_budget_bytes = max(int((cap - (8 << 20)) * 0.75), 16 << 20)

    single_buf = _supports_buffered()
    const_bufs = 1 if single_buf else 2

    # Resident weights + biases (single-buffered when supported).
    resident = const_bufs * (2 * F * F * w_itemsize + 2 * F * 4)
    # Per batch row: double-buffered x + out tiles, plus in-kernel f32/bf16 temps.
    per_row = F * (4 * io_itemsize + 4 + w_itemsize)

    avail = vmem_budget_bytes - resident
    if avail < per_row * _SUBLANE:
        # TODO(synk): feature-dim (K/N) streaming path for very large F (resident
        # weights exceeding the VMEM budget) not implemented; fall back to min tile.
        max_tile = _SUBLANE
    else:
        max_tile = min(avail // per_row, 1024)

    b_pad8 = _round_up(B, _SUBLANE)
    tile_b = _choose_tile_b(b_pad8, max_tile)
    B_pad = _round_up(B, tile_b)

    x_in = x.astype(io_dtype)
    if B_pad != B:
        x_in = jnp.pad(x_in, ((0, B_pad - B), (0, 0)))

    vmem_limit = resident + tile_b * per_row + (4 << 20)
    vmem_limit = int(min(max(vmem_limit, 16 << 20), cap - (2 << 20)))

    flops = 4 * B_pad * F * F
    bytes_accessed = int(2 * B_pad * F * io_itemsize      # x in + out
                         + 2 * F * F * w_itemsize          # weights (resident)
                         + 2 * F * 4)                      # biases

    def _run(use_single_buffer):
        x_spec = pl.BlockSpec((tile_b, F), lambda i: (i, 0))
        w_spec = _const_spec((F, F), use_single_buffer)
        b_spec = _const_spec((1, F), use_single_buffer)
        return pl.pallas_call(
            _masked_resblock_kernel,
            out_shape=jax.ShapeDtypeStruct((B_pad, F), io_dtype),
            grid=(B_pad // tile_b,),
            in_specs=[x_spec, w_spec, b_spec, w_spec, b_spec],
            out_specs=x_spec,
            compiler_params=pltpu.CompilerParams(
                dimension_semantics=("parallel",),
                vmem_limit_bytes=vmem_limit),
            cost_estimate=pl.CostEstimate(
                flops=flops, transcendentals=0, bytes_accessed=bytes_accessed),
        )(x_in, w0t, b0, w1t, b1)

    if single_buf:
        try:
            out = _run(True)
        except Exception:
            out = _run(False)   # safety fallback: default double-buffered consts
    else:
        out = _run(False)

    return out if B_pad == B else out[:B]


def _reference(x, w0, b0, w1, b1, mask):
    h = jnp.maximum(x, 0.0)
    h = h @ (mask * w0).T + b0
    h = jnp.maximum(h, 0.0)
    h = h @ (mask * w1).T + b1
    return x + h


if __name__ == "__main__":
    B, F = 12, 32  # in_features == out_features (asserted by the module)
    key = jax.random.PRNGKey(0)
    kx, k0w, k0b, k1w, k1b = jax.random.split(key, 5)

    x = jax.random.normal(kx, (B, F), dtype=jnp.float32)

    # Deterministic parameter init (nn.Linear-like shapes/bounds).
    bound = 1.0 / jnp.sqrt(F)
    w0 = jax.random.uniform(k0w, (F, F), minval=-bound, maxval=bound, dtype=jnp.float32)
    b0 = jax.random.uniform(k0b, (F,), minval=-bound, maxval=bound, dtype=jnp.float32)
    w1 = jax.random.uniform(k1w, (F, F), minval=-bound, maxval=bound, dtype=jnp.float32)
    b1 = jax.random.uniform(k1b, (F,), minval=-bound, maxval=bound, dtype=jnp.float32)

    # Deterministic MADE-style autoregressive mask in [out, in] layout (same mask
    # applied to both layers, as in MaskedResidualBlock.set_mask()).
    degrees = jnp.arange(F)
    mask = (degrees[:, None] >= degrees[None, :]).astype(jnp.float32)

    # TODO(synk): condition_on_ordering=True extra linear path not implemented
    # (module default is False).

    # Hoisted per-weight-set preparation (done once, reused across forward calls).
    w0t, b0p, w1t, b1p = prepare_masked_residual_params(w0, b0, w1, b1, mask)

    y = masked_residual_block(x, w0t, b0p, w1t, b1p)
    jax.block_until_ready(y)

    y_ref = _reference(x, w0, b0, w1, b1, mask)
    assert y.shape == y_ref.shape, (y.shape, y_ref.shape)
    # bf16 MXU operands with f32 accumulation -> relaxed tolerance vs f32 reference.
    assert jnp.allclose(y, y_ref, atol=5e-2, rtol=5e-2), "mismatch vs reference"

    print("KERNEL_OK")
</pallas_src>

<mosaic_0001>
module attributes {stable_mosaic.version = 11 : i64} {
  func.func @_masked_resblock_kernel(%arg0: i32, %arg1: memref<8x32xf32, #tpu.memory_space<vmem>>, %arg2: memref<32x32xbf16, #tpu.memory_space<vmem>>, %arg3: memref<1x32xf32, #tpu.memory_space<vmem>>, %arg4: memref<32x32xbf16, #tpu.memory_space<vmem>>, %arg5: memref<1x32xf32, #tpu.memory_space<vmem>>, %arg6: memref<8x32xf32, #tpu.memory_space<vmem>>) attributes {dimension_semantics = [#tpu.dimension_semantics<parallel>], iteration_bounds = array<i64: 2>, scalar_prefetch = 0 : i64, scratch_operands = 0 : i64, tpu.core_type = #tpu.core_type<tc>, window_params = [{transform_indices = @transform_0, window_bounds = array<i64: 8, 32>}, {pipeline_mode = #tpu.pipeline_mode<synchronous>, transform_indices = @transform_1, window_bounds = array<i64: 32, 32>}, {pipeline_mode = #tpu.pipeline_mode<synchronous>, transform_indices = @transform_2, window_bounds = array<i64: 1, 32>}, {pipeline_mode = #tpu.pipeline_mode<synchronous>, transform_indices = @transform_3, window_bounds = array<i64: 32, 32>}, {pipeline_mode = #tpu.pipeline_mode<synchronous>, transform_indices = @transform_4, window_bounds = array<i64: 1, 32>}, {transform_indices = @transform_5, window_bounds = array<i64: 8, 32>}]} {
    %c0 = arith.constant 0 : index
    %c0_0 = arith.constant 0 : index
    %0 = vector.load %arg1[%c0, %c0_0] : memref<8x32xf32, #tpu.memory_space<vmem>>, vector<8x32xf32>
    %cst = arith.constant 0.000000e+00 : f32
    %1 = vector.broadcast %cst : f32 to vector<8x32xf32>
    %2 = arith.maximumf %0, %1 : vector<8x32xf32>
    %3 = arith.truncf %2 : vector<8x32xf32> to vector<8x32xbf16>
    %c0_1 = arith.constant 0 : index
    %c0_2 = arith.constant 0 : index
    %4 = vector.load %arg2[%c0_1, %c0_2] : memref<32x32xbf16, #tpu.memory_space<vmem>>, vector<32x32xbf16>
    %cst_3 = arith.constant dense<0.000000e+00> : vector<8x32xf32>
    %5 = tpu.matmul %3, %4, %cst_3 {dimension_numbers = #tpu.dot_dimension_numbers<[1], [0], [0], [1], [0, 0, 1, 1], [], []>} : vector<8x32xbf16>, vector<32x32xbf16>, vector<8x32xf32> -> vector<8x32xf32>
    %c0_4 = arith.constant 0 : index
    %c0_5 = arith.constant 0 : index
    %6 = vector.load %arg3[%c0_4, %c0_5] : memref<1x32xf32, #tpu.memory_space<vmem>>, vector<1x32xf32>
    %7 = vector.broadcast %6 : vector<1x32xf32> to vector<8x32xf32>
    %8 = arith.addf %5, %7 : vector<8x32xf32>
    %cst_6 = arith.constant 0.000000e+00 : f32
    %9 = vector.broadcast %cst_6 : f32 to vector<8x32xf32>
    %10 = arith.maximumf %8, %9 : vector<8x32xf32>
    %11 = arith.truncf %10 : vector<8x32xf32> to vector<8x32xbf16>
    %c0_7 = arith.constant 0 : index
    %c0_8 = arith.constant 0 : index
    %12 = vector.load %arg4[%c0_7, %c0_8] : memref<32x32xbf16, #tpu.memory_space<vmem>>, vector<32x32xbf16>
    %cst_9 = arith.constant dense<0.000000e+00> : vector<8x32xf32>
    %13 = tpu.matmul %11, %12, %cst_9 {dimension_numbers = #tpu.dot_dimension_numbers<[1], [0], [0], [1], [0, 0, 1, 1], [], []>} : vector<8x32xbf16>, vector<32x32xbf16>, vector<8x32xf32> -> vector<8x32xf32>
    %c0_10 = arith.constant 0 : index
    %c0_11 = arith.constant 0 : index
    %14 = vector.load %arg5[%c0_10, %c0_11] : memref<1x32xf32, #tpu.memory_space<vmem>>, vector<1x32xf32>
    %15 = vector.broadcast %14 : vector<1x32xf32> to vector<8x32xf32>
    %16 = arith.addf %13, %15 : vector<8x32xf32>
    %17 = arith.addf %0, %16 : vector<8x32xf32>
    %c0_12 = arith.constant 0 : index
    %c0_13 = arith.constant 0 : index
    %18 = vector.load %arg6[%c0_12, %c0_13] : memref<8x32xf32, #tpu.memory_space<vmem>>, vector<8x32xf32>
    tpu.vector_store %arg6[%c0_12, %c0_13], %17 {strides = array<i32>} : memref<8x32xf32, #tpu.memory_space<vmem>>, vector<8x32xf32>,
    return
  }
  func.func @transform_0(%arg0: i32) -> (i32, i32) {
    %c0_i32 = arith.constant 0 : i32
    %c0_i32_0 = arith.constant 0 : i32
    return %arg0, %c0_i32 : i32, i32
  }
  func.func @transform_1(%arg0: i32) -> (i32, i32) {
    %c0_i32 = arith.constant 0 : i32
    %c0_i32_0 = arith.constant 0 : i32
    %c0_i32_1 = arith.constant 0 : i32
    return %c0_i32, %c0_i32_0 : i32, i32
  }
  func.func @transform_2(%arg0: i32) -> (i32, i32) {
    %c0_i32 = arith.constant 0 : i32
    %c0_i32_0 = arith.constant 0 : i32
    %c0_i32_1 = arith.constant 0 : i32
    return %c0_i32, %c0_i32_0 : i32, i32
  }
  func.func @transform_3(%arg0: i32) -> (i32, i32) {
    %c0_i32 = arith.constant 0 : i32
    %c0_i32_0 = arith.constant 0 : i32
    %c0_i32_1 = arith.constant 0 : i32
    return %c0_i32, %c0_i32_0 : i32, i32
  }
  func.func @transform_4(%arg0: i32) -> (i32, i32) {
    %c0_i32 = arith.constant 0 : i32
    %c0_i32_0 = arith.constant 0 : i32
    %c0_i32_1 = arith.constant 0 : i32
    return %c0_i32, %c0_i32_0 : i32, i32
  }
  func.func @transform_5(%arg0: i32) -> (i32, i32) {
    %c0_i32 = arith.constant 0 : i32
    %c0_i32_0 = arith.constant 0 : i32
    return %arg0, %c0_i32 : i32, i32
  }
}

module attributes {stable_mosaic.version = 11 : i64} {
  func.func @_masked_resblock_kernel(%arg0: i32, %arg1: memref<8x32xf32, #tpu.memory_space<vmem>>, %arg2: memref<32x32xbf16, #tpu.memory_space<vmem>>, %arg3: memref<1x32xf32, #tpu.memory_space<vmem>>, %arg4: memref<32x32xbf16, #tpu.memory_space<vmem>>, %arg5: memref<1x32xf32, #tpu.memory_space<vmem>>, %arg6: memref<8x32xf32, #tpu.memory_space<vmem>>) attributes {dimension_semantics = [#tpu.dimension_semantics<parallel>], iteration_bounds = array<i64: 2>, scalar_prefetch = 0 : i64, scratch_operands = 0 : i64, tpu.core_type = #tpu.core_type<tc>, window_params = [{transform_indices = @transform_0, window_bounds = array<i64: 8, 32>}, {pipeline_mode = #tpu.pipeline_mode<synchronous>, transform_indices = @transform_1, window_bounds = array<i64: 32, 32>}, {pipeline_mode = #tpu.pipeline_mode<synchronous>, transform_indices = @transform_2, window_bounds = array<i64: 1, 32>}, {pipeline_mode = #tpu.pipeline_mode<synchronous>, transform_indices = @transform_3, window_bounds = array<i64: 32, 32>}, {pipeline_mode = #tpu.pipeline_mode<synchronous>, transform_indices = @transform_4, window_bounds = array<i64: 1, 32>}, {transform_indices = @transform_5, window_bounds = array<i64: 8, 32>}]} {
    %c0 = arith.constant 0 : index
    %c0_0 = arith.constant 0 : index
    %0 = vector.load %arg1[%c0, %c0_0] : memref<8x32xf32, #tpu.memory_space<vmem>>, vector<8x32xf32>
    %cst = arith.constant 0.000000e+00 : f32
    %1 = vector.broadcast %cst : f32 to vector<8x32xf32>
    %2 = arith.maximumf %0, %1 : vector<8x32xf32>
    %3 = arith.truncf %2 : vector<8x32xf32> to vector<8x32xbf16>
    %c0_1 = arith.constant 0 : index
    %c0_2 = arith.constant 0 : index
    %4 = vector.load %arg2[%c0_1, %c0_2] : memref<32x32xbf16, #tpu.memory_space<vmem>>, vector<32x32xbf16>
    %cst_3 = arith.constant dense<0.000000e+00> : vector<8x32xf32>
    %5 = tpu.matmul %3, %4, %cst_3 {dimension_numbers = #tpu.dot_dimension_numbers<[1], [0], [0], [1], [0, 0, 1, 1], [], []>} : vector<8x32xbf16>, vector<32x32xbf16>, vector<8x32xf32> -> vector<8x32xf32>
    %c0_4 = arith.constant 0 : index
    %c0_5 = arith.constant 0 : index
    %6 = vector.load %arg3[%c0_4, %c0_5] : memref<1x32xf32, #tpu.memory_space<vmem>>, vector<1x32xf32>
    %7 = vector.broadcast %6 : vector<1x32xf32> to vector<8x32xf32>
    %8 = arith.addf %5, %7 : vector<8x32xf32>
    %cst_6 = arith.constant 0.000000e+00 : f32
    %9 = vector.broadcast %cst_6 : f32 to vector<8x32xf32>
    %10 = arith.maximumf %8, %9 : vector<8x32xf32>
    %11 = arith.truncf %10 : vector<8x32xf32> to vector<8x32xbf16>
    %c0_7 = arith.constant 0 : index
    %c0_8 = arith.constant 0 : index
    %12 = vector.load %arg4[%c0_7, %c0_8] : memref<32x32xbf16, #tpu.memory_space<vmem>>, vector<32x32xbf16>
    %cst_9 = arith.constant dense<0.000000e+00> : vector<8x32xf32>
    %13 = tpu.matmul %11, %12, %cst_9 {dimension_numbers = #tpu.dot_dimension_numbers<[1], [0], [0], [1], [0, 0, 1, 1], [], []>} : vector<8x32xbf16>, vector<32x32xbf16>, vector<8x32xf32> -> vector<8x32xf32>
    %c0_10 = arith.constant 0 : index
    %c0_11 = arith.constant 0 : index
    %14 = vector.load %arg5[%c0_10, %c0_11] : memref<1x32xf32, #tpu.memory_space<vmem>>, vector<1x32xf32>
    %15 = vector.broadcast %14 : vector<1x32xf32> to vector<8x32xf32>
    %16 = arith.addf %13, %15 : vector<8x32xf32>
    %17 = arith.addf %0, %16 : vector<8x32xf32>
    %c0_12 = arith.constant 0 : index
    %c0_13 = arith.constant 0 : index
    %18 = vector.load %arg6[%c0_12, %c0_13] : memref<8x32xf32, #tpu.memory_space<vmem>>, vector<8x32xf32>
    tpu.vector_store %arg6[%c0_12, %c0_13], %17 {strides = array<i32>} : memref<8x32xf32, #tpu.memory_space<vmem>>, vector<8x32xf32>,
    return
  }
  func.func @transform_0(%arg0: i32) -> (i32, i32) {
    %c0_i32 = arith.constant 0 : i32
    %c0_i32_0 = arith.constant 0 : i32
    return %arg0, %c0_i32 : i32, i32
  }
  func.func @transform_1(%arg0: i32) -> (i32, i32) {
    %c0_i32 = arith.constant 0 : i32
    %c0_i32_0 = arith.constant 0 : i32
    %c0_i32_1 = arith.constant 0 : i32
    return %c0_i32, %c0_i32_0 : i32, i32
  }
  func.func @transform_2(%arg0: i32) -> (i32, i32) {
    %c0_i32 = arith.constant 0 : i32
    %c0_i32_0 = arith.constant 0 : i32
    %c0_i32_1 = arith.constant 0 : i32
    return %c0_i32, %c0_i32_0 : i32, i32
  }
  func.func @transform_3(%arg0: i32) -> (i32, i32) {
    %c0_i32 = arith.constant 0 : i32
    %c0_i32_0 = arith.constant 0 : i32
    %c0_i32_1 = arith.constant 0 : i32
    return %c0_i32, %c0_i32_0 : i32, i32
  }
  func.func @transform_4(%arg0: i32) -> (i32, i32) {
    %c0_i32 = arith.constant 0 : i32
    %c0_i32_0 = arith.constant 0 : i32
    %c0_i32_1 = arith.constant 0 : i32
    return %c0_i32, %c0_i32_0 : i32, i32
  }
  func.func @transform_5(%arg0: i32) -> (i32, i32) {
    %c0_i32 = arith.constant 0 : i32
    %c0_i32_0 = arith.constant 0 : i32
    return %arg0, %c0_i32 : i32, i32
  }
}

</mosaic_0001>

<bundles_post_ra>
// kernel: tpu_custom_call.1
= control target key start
LH: loop header
LB: loop body
LE: loop exit
PB: predicated region body
PF: predicated region fallthrough
CT: control target
= control target key end

     0   :  { %10 = vsyncpa [#allocation3], 0  ;;  %s924_s0 = inlined_call_operand.hbm [shape: f32[16,32], index: 0, kind: input, shape index: {}]   ;;  %s925_s1 = inlined_call_operand.hbm [shape: bf16[32,32], index: 1, kind: input, shape index: {}]   ;;  %s926_s2 = inlined_call_operand.vmem [shape: f32[1,32], index: 2, kind: input, shape index: {}]   ;;  %s927_s3 = inlined_call_operand.hbm [shape: bf16[32,32], index: 3, kind: input, shape index: {}]   ;;  %s928_s4 = inlined_call_operand.vmem [shape: f32[1,32], index: 4, kind: input, shape index: {}]   ;;  %s929_s5 = inlined_call_operand.hbm [shape: f32[16,32], index: 5, kind: output, shape index: {}]  }
   0x1   :  { %12 = vsyncpa [#allocation3 + $0x1], 0 }
   0x2   :  { %13 = vsyncpa [#allocation6], 0 }
   0x3   :  { %14 = vsyncpa [#allocation4], 0 }
   0x4   :  { %16 = vsyncpa [#allocation4 + $0x1], 0  ;;  %s766_s18 = smov 0   ;;  %s768_s19 = smov 0  }
   0x5   :  { %s770_s20 = smov 0   ;;  %s772_s21 = smov 0  }
   0x6 LB: > { %s174_s24 = sshll.u32 %s925_s1, 4  ;;  %s790_s25 = sadd.s32 4294967295, %s730_s21   ;;  %s730_s21 = sphi %s772_s21, %s940_s21   ;;  %s726_s20 = sphi %s770_s20, %s939_s20   ;;  %s722_s19 = sphi %s768_s19, %s938_s19   ;;  %s718_s18 = sphi %s766_s18, %s937_s18   ;;  %s175_s24 = int_to_ptr.hbm [resolvable:$true] %s174_s24 }
   0x7   : > { %p462_p0 = scmp.ge.s32.totalorder %s730_s21, 1  ;;  %p43_p1 = scmp.eq.s32.totalorder %s790_s25, 0 }
   0x8   : > { %p163_p2 = scmp.lt.s32.totalorder %s730_s21, 3  ;;  %s732_s27 = smov [#allocation5]  }
   0x9   : > { %s176_s28 = sshll.u32 %s732_s27, 4  ;;  %s191_s6 = sshll.u32 %s927_s3, 4  ;;  %s177_s28 = int_to_ptr.vmem [resolvable:$true] %s176_s28  ;;  %s192_s6 = int_to_ptr.hbm [resolvable:$true] %s191_s6 }
   0xa   : > { %p795_p3 = pnand %p462_p0, %p163_p2  ;;  %s733_s7 = smov [#allocation7]  }
   0xb   : > { %s193_s8 = sshll.u32 %s733_s7, 4  ;;  %s734_s9 = smov 64   ;;  %s194_s8 = int_to_ptr.vmem [resolvable:$true] %s193_s8 }
   0xc   : > { %p511_p4 = pneg %p795_p3  ;;  %s735_s10 = smov 4  }
   0xd   : > { %s461_s11 = sadd.s32 4294967294, %s730_s21   ;;  %s809_s12 = sadd.s32 1, %s730_s21  }
   0xe   : > { %p512_p6 = pnand %p511_p4, %p43_p1  ;;  %s26_s13 = ssub.s32 %s730_s21, %s809_s12 }
   0xf   : > { %s29_s14 = sadd.s32 1, %s726_s20  ;;  %p27_p7 = scmp.eq.s32.totalorder %s26_s13, 0 }
  0x10   : > { %514 = dma.hbm_to_vmem [thread:$0]  (!%p512_p6), %s175_s24, 256, %s177_s28, [#allocation6], %s734_s9, %s734_s9, %s735_s10  }
  0x11   : > { %517 = dma.hbm_to_vmem [thread:$0]  (!%p512_p6), %s192_s6, 256, %s194_s8, [#allocation6], %s734_s9, %s734_s9, %s735_s10  }
  0x12   : > { %p36_p8 = scmp.ne.s32.totalorder %s726_s20, %s722_s19  ;;  %p37_p9 = scmp.eq.s32.totalorder %s730_s21, 0 }
  0x13   : > { %p42_p10 = scmp.ne.s32.totalorder %s722_s19, %s718_s18  ;;  %p150_p13 = scmp.eq.s32.totalorder %s790_s25, 1 }
  0x14   : > { %s820_s15 = scalar_select %p27_p7, %s726_s20, %s29_s14  }
  0x15   : > { %p822_p11 = por %p37_p9, %p36_p8  ;;  %p828_p12 = por %p43_p1, %p42_p10 }
  0x16   : > { %p156_p0 = scmp.eq.s32.totalorder %s461_s11, 1  ;;  %p528_p2 = scmp.lt.s32.totalorder %s730_s21, 2 }
  0x17   : > { %s210_s22 = sand.u32 1, %s726_s20   ;;  %p835_p4 = por %p150_p13, %p36_p8 }
  0x18   : > { %p839_p6 = por %p156_p0, %p42_p10  ;;  %s466_s27 = sshll.u32 %s210_s22, 3 }
  0x19   : > { %s467_s28 = sshll.u32 %s730_s21, 3  ;;  %s214_s7 = scalar_lea.vmem [#allocation2], %s466_s27 }
  0x1a   : > { %s218_s6 = scalar_lea.hbm %s924_s0, %s467_s28  ;;  %s222_s8 = sshll.u32 %s214_s7, 4  ;;  %s223_s8 = int_to_ptr.vmem [resolvable:$true] %s222_s8 }
  0x1b   : > { %s220_s9 = sshll.u32 %s218_s6, 4  ;;  %p849_p7 = pnand %p528_p2, %p822_p11  ;;  %s221_s9 = int_to_ptr.hbm [resolvable:$true] %s220_s9 }
  0x1c   : > { %s211_s11 = scalar_lea.sflag [#allocation3], %s210_s22  ;;  %s630_s13 = sshra.s32 %s221_s9, 4  ;;  %s631_s13 = int_to_ptr.hbm [resolvable:$true] %s630_s13 }
  0x1d   : > { %s632_s14 = scalar_lea.hbm %s631_s13, 8  ;;  %p634_p9 = pneg %p849_p7 }
  0x1e   : > { %p633_p8 = scmp.ne.s32.totalorder %s631_s13, %s632_s14  ;;  %s637_s29 = scalar_lea.hbm %s924_s0, 16 }
  0x1f   : > { %p638_p11 = scmp.lt.s32.totalorder %s631_s13, %s924_s0  ;;  %p639_p0 = scmp.lt.s32.totalorder %s637_s29, %s632_s14 }
  0x20   : > { %p635_p10 = pnand %p634_p9, %p633_p8 }
  0x21   : > { %p640_p2 = por %p639_p0, %p638_p11 }
  0x22   : > { %p636_p13 = pneg %p635_p10 }
  0x24   : > { %p641_p5 = pnand %p640_p2, %p636_p13 }
  0x26   : > { %644 = shalt.err (!%p641_p5)
}
  0x27   : > { %521 = dma.hbm_to_vmem [thread:$0]  (!%p849_p7), %s221_s9, 128, %s223_s8, %s211_s11  }
  0x28   : > { %231 = sbr.rel (%p795_p3) target bundleno = 322 (0x142), region = 40  ;;  %s866_s22 = sand.u32 (!%p795_p3), 1, %s722_s19  }
  0x29   : > { %s469_s6 = sshll.u32 (!%p795_p3), %s866_s22, 3  ;;  %s234_s7 = scalar_lea.sflag (!%p795_p3), [#allocation3], %s866_s22 }
  0x2a   : > { %s237_s13 = scalar_lea.vmem (!%p795_p3), [#allocation2], %s469_s6 }
  0x2d   : > { %705 = dma.done.wait (%p828_p12), %s234_s7, 128  }
  0x2e   : > { %707 = vsyncadd (%p828_p12), %s234_s7, 4294967168 }
  0x2f   : > { %709 = dma.done.wait (%p43_p1), [#allocation6], 512  }
  0x30   : > { %711 = vsyncadd (%p43_p1), [#allocation6], 4294966784  ;;  %v496_v0 = vld [vmem:[#allocation5 + $0x8] sm:$0xff]  ;;  %v276_v1 = vld [vmem:[%s237_s13] sm:$0xff]  ;;  %vm299_vm0 = vcmask 261120   ;;  %s492_s8 = sshll.u32 %s790_s25, 3 }
  0x31   : > { %v277_v2 = vmax.f32 %v276_v1, 0.0  ;;  %309 = vmatpush.bf16.msra.mxu0 %v496_v0  ;;  %v495_v3 = vld [vmem:[#allocation5] sm:$0xff]  ;;  %v498_v5 = vld [vmem:[#allocation7 + $0x8] sm:$0xff]  ;;  %v497_v6 = vld [vmem:[#allocation7] sm:$0xff]  ;;  %s367_s27 = scalar_lea.hbm %s929_s5, %s492_s8  ;;  %s274_s28 = scalar_lea.vmem [#allocation8], %s469_s6 }
  0x32   : > { %347 = vmatpush.bf16.msra.mxu1 %v498_v5  ;;  %v568_v7 = vld [vmem:[%s926_s2] ss:$0 sm:$0xff]  ;;  %s369_s29 = sshll.u32 %s274_s28, 4  ;;  %s371_s30 = sshll.u32 %s367_s27, 4  ;;  %s370_s29 = int_to_ptr.vmem [resolvable:$true] %s369_s29  ;;  %s372_s30 = int_to_ptr.hbm [resolvable:$true] %s371_s30 }
  0x33   : > { %v278_v4 = vpack.c.bf16 %v277_v2, %v277_v2  ;;  %v569_v13 = vld [vmem:[%s928_s4] ss:$0 sm:$0xff]  ;;  %s357_s25 = scalar_lea.sflag [#allocation4], %s866_s22  ;;  %s674_s16 = sshra.s32 %s372_s30, 4  ;;  %s675_s16 = int_to_ptr.hbm [resolvable:$true] %s674_s16 }
  0x34   : > { %s676_s7 = scalar_lea.hbm %s675_s16, 8  ;;  %s680_s6 = scalar_lea.hbm %s929_s5, 16 }
  0x35   : > { %310 = vmatpush.bf16.msra.mxu0 %v495_v3  ;;  %p677_p1 = scmp.ne.s32.totalorder %s675_s16, %s676_s7  ;;  %p681_p12 = scmp.lt.s32.totalorder %s675_s16, %s929_s5 }
  0x36   : > { %348 = vmatpush.bf16.msra.mxu1 %v497_v6  ;;  %p682_p7 = scmp.lt.s32.totalorder %s680_s6, %s676_s7 }
  0x37   : > { %p678_p3 = pnand %p677_p1, %p835_p4 }
  0x38   : > { %481 = vmatmul.msk.bf16.vlgmr.msra.gmra.mxu0 %vm299_vm0, %v278_v4  ;;  %p683_p8 = por %p682_p7, %p681_p12 }
  0x39   : > { %p679_p5 = pneg %p678_p3 }
  0x3b   : > { %p684_p9 = pnand %p683_p8, %p679_p5 }
  0xb5   : > { %v312_v8 = vpop.f32.mrf.mxu0 }
  0xb6   : > { %v313_v9 = vadd.f32 %v568_v7, %v312_v8 }
  0xb8   : > { %v316_v10 = vmax.f32 %v313_v9, 0.0 }
  0xba   : > { %v317_v11 = vpack.c.bf16 %v316_v10, %v316_v10 }
  0xbc   : > { %490 = vmatmul.msk.bf16.vlgmr.msra.gmra.mxu1 %vm299_vm0, %v317_v11 }
  0xbd   : > { %v314_v12 = vpop.f32.mrf.mxu0 }
 0x139   : > { %v350_v14 = vpop.f32.mrf.mxu1 }
 0x13a   : > { %v351_v15 = vadd.f32 %v569_v13, %v350_v14 }
 0x13c   : > { %v354_v16 = vadd.f32 %v351_v15, %v276_v1 }
 0x13e   : > { %355 = vst.msk [vmem:[%s274_s28] sm:$0xff] %vm299_vm0, %v354_v16 }
 0x13f   : > { %687 = shalt.err (!%p684_p9)
}
 0x140   : > { %509 = dma.vmem_to_hbm [thread:$0]  (%p835_p4), %s370_s29, 128, %s372_s30, %s357_s25  }
 0x141   : > { %v352_v17 = vpop.f32.mrf.mxu1 }
 0x142 PF: > { %s383_s22 = sand.u32 1, %s718_s18   ;;  %p936_p10 = scmp.ge.s32.totalorder %s730_s21, 2 }
 0x143   : > { %s384_s9 = scalar_lea.sflag [#allocation4], %s383_s22 }
 0x144   : > { %p523_p13 = pnand %p936_p10, %p839_p6 }
 0x146   : > { %p524_p11 = pneg %p523_p13 }
 0x148   : > { %713 = dma.done.wait (%p524_p11), %s384_s9, 128  }
 0x149   : > { %715 = vsyncadd (%p524_p11), %s384_s9, 4294967168  ;;  %p19_p0 = scmp.ge.s32.totalorder %s809_s12, 4   ;;  %s937_s18 = smov %s722_s19 }
 0x14a   : > { %s938_s19 = smov %s726_s20  ;;  %s939_s20 = smov %s820_s15 }
 0x14b   : > { %s940_s21 = smov %s809_s12  ;;  %21 = sbr.rel (!%p19_p0) target bundleno = 6 (0x6), region = 93 }
 0x150   :  { %390 = vsyncpa [#allocation3], 1 }
 0x151   :  { %392 = vsyncpa [#allocation3 + $0x1], 1 }
 0x152   :  { %393 = vsyncpa [#allocation6], 1 }
 0x153   :  { %394 = vsyncpa [#allocation4], 1 }
 0x154   :  { %396 = vsyncpa [#allocation4 + $0x1], 1 }

// kernel: tpu_custom_call.1
= control target key start
LH: loop header
LB: loop body
LE: loop exit
PB: predicated region body
PF: predicated region fallthrough
CT: control target
= control target key end

     0   :  { %10 = vsyncpa [#allocation3], 0  ;;  %s924_s0 = inlined_call_operand.hbm [shape: f32[16,32], index: 0, kind: input, shape index: {}]   ;;  %s925_s1 = inlined_call_operand.hbm [shape: bf16[32,32], index: 1, kind: input, shape index: {}]   ;;  %s926_s2 = inlined_call_operand.vmem [shape: f32[1,32], index: 2, kind: input, shape index: {}]   ;;  %s927_s3 = inlined_call_operand.hbm [shape: bf16[32,32], index: 3, kind: input, shape index: {}]   ;;  %s928_s4 = inlined_call_operand.vmem [shape: f32[1,32], index: 4, kind: input, shape index: {}]   ;;  %s929_s5 = inlined_call_operand.hbm [shape: f32[16,32], index: 5, kind: output, shape index: {}]  }
   0x1   :  { %12 = vsyncpa [#allocation3 + $0x1], 0 }
   0x2   :  { %13 = vsyncpa [#allocation6], 0 }
   0x3   :  { %14 = vsyncpa [#allocation4], 0 }
   0x4   :  { %16 = vsyncpa [#allocation4 + $0x1], 0  ;;  %s766_s18 = smov 0   ;;  %s768_s19 = smov 0  }
   0x5   :  { %s770_s20 = smov 0   ;;  %s772_s21 = smov 0  }
   0x6 LB: > { %s174_s24 = sshll.u32 %s925_s1, 4  ;;  %s790_s25 = sadd.s32 4294967295, %s730_s21   ;;  %s730_s21 = sphi %s772_s21, %s940_s21   ;;  %s726_s20 = sphi %s770_s20, %s939_s20   ;;  %s722_s19 = sphi %s768_s19, %s938_s19   ;;  %s718_s18 = sphi %s766_s18, %s937_s18   ;;  %s175_s24 = int_to_ptr.hbm [resolvable:$true] %s174_s24 }
   0x7   : > { %p462_p0 = scmp.ge.s32.totalorder %s730_s21, 1  ;;  %p43_p1 = scmp.eq.s32.totalorder %s790_s25, 0 }
   0x8   : > { %p163_p2 = scmp.lt.s32.totalorder %s730_s21, 3  ;;  %s732_s27 = smov [#allocation5]  }
   0x9   : > { %s176_s28 = sshll.u32 %s732_s27, 4  ;;  %s191_s6 = sshll.u32 %s927_s3, 4  ;;  %s177_s28 = int_to_ptr.vmem [resolvable:$true] %s176_s28  ;;  %s192_s6 = int_to_ptr.hbm [resolvable:$true] %s191_s6 }
   0xa   : > { %p795_p3 = pnand %p462_p0, %p163_p2  ;;  %s733_s7 = smov [#allocation7]  }
   0xb   : > { %s193_s8 = sshll.u32 %s733_s7, 4  ;;  %s734_s9 = smov 64   ;;  %s194_s8 = int_to_ptr.vmem [resolvable:$true] %s193_s8 }
   0xc   : > { %p511_p4 = pneg %p795_p3  ;;  %s735_s10 = smov 4  }
   0xd   : > { %s461_s11 = sadd.s32 4294967294, %s730_s21   ;;  %s809_s12 = sadd.s32 1, %s730_s21  }
   0xe   : > { %p512_p6 = pnand %p511_p4, %p43_p1  ;;  %s26_s13 = ssub.s32 %s730_s21, %s809_s12 }
   0xf   : > { %s29_s14 = sadd.s32 1, %s726_s20  ;;  %p27_p7 = scmp.eq.s32.totalorder %s26_s13, 0 }
  0x10   : > { %514 = dma.hbm_to_vmem [thread:$0]  (!%p512_p6), %s175_s24, 256, %s177_s28, [#allocation6], %s734_s9, %s734_s9, %s735_s10  }
  0x11   : > { %517 = dma.hbm_to_vmem [thread:$0]  (!%p512_p6), %s192_s6, 256, %s194_s8, [#allocation6], %s734_s9, %s734_s9, %s735_s10  }
  0x12   : > { %p36_p8 = scmp.ne.s32.totalorder %s726_s20, %s722_s19  ;;  %p37_p9 = scmp.eq.s32.totalorder %s730_s21, 0 }
  0x13   : > { %p42_p10 = scmp.ne.s32.totalorder %s722_s19, %s718_s18  ;;  %p150_p13 = scmp.eq.s32.totalorder %s790_s25, 1 }
  0x14   : > { %s820_s15 = scalar_select %p27_p7, %s726_s20, %s29_s14  }
  0x15   : > { %p822_p11 = por %p37_p9, %p36_p8  ;;  %p828_p12 = por %p43_p1, %p42_p10 }
  0x16   : > { %p156_p0 = scmp.eq.s32.totalorder %s461_s11, 1  ;;  %p528_p2 = scmp.lt.s32.totalorder %s730_s21, 2 }
  0x17   : > { %s210_s22 = sand.u32 1, %s726_s20   ;;  %p835_p4 = por %p150_p13, %p36_p8 }
  0x18   : > { %p839_p6 = por %p156_p0, %p42_p10  ;;  %s466_s27 = sshll.u32 %s210_s22, 3 }
  0x19   : > { %s467_s28 = sshll.u32 %s730_s21, 3  ;;  %s214_s7 = scalar_lea.vmem [#allocation2], %s466_s27 }
  0x1a   : > { %s218_s6 = scalar_lea.hbm %s924_s0, %s467_s28  ;;  %s222_s8 = sshll.u32 %s214_s7, 4  ;;  %s223_s8 = int_to_ptr.vmem [resolvable:$true] %s222_s8 }
  0x1b   : > { %s220_s9 = sshll.u32 %s218_s6, 4  ;;  %p849_p7 = pnand %p528_p2, %p822_p11  ;;  %s221_s9 = int_to_ptr.hbm [resolvable:$true] %s220_s9 }
  0x1c   : > { %s211_s11 = scalar_lea.sflag [#allocation3], %s210_s22  ;;  %s630_s13 = sshra.s32 %s221_s9, 4  ;;  %s631_s13 = int_to_ptr.hbm [resolvable:$true] %s630_s13 }
  0x1d   : > { %s632_s14 = scalar_lea.hbm %s631_s13, 8  ;;  %p634_p9 = pneg %p849_p7 }
  0x1e   : > { %p633_p8 = scmp.ne.s32.totalorder %s631_s13, %s632_s14  ;;  %s637_s29 = scalar_lea.hbm %s924_s0, 16 }
  0x1f   : > { %p638_p11 = scmp.lt.s32.totalorder %s631_s13, %s924_s0  ;;  %p639_p0 = scmp.lt.s32.totalorder %s637_s29, %s632_s14 }
  0x20   : > { %p635_p10 = pnand %p634_p9, %p633_p8 }
  0x21   : > { %p640_p2 = por %p639_p0, %p638_p11 }
  0x22   : > { %p636_p13 = pneg %p635_p10 }
  0x24   : > { %p641_p5 = pnand %p640_p2, %p636_p13 }
  0x26   : > { %644 = shalt.err (!%p641_p5)
}
  0x27   : > { %521 = dma.hbm_to_vmem [thread:$0]  (!%p849_p7), %s221_s9, 128, %s223_s8, %s211_s11  }
  0x28   : > { %231 = sbr.rel (%p795_p3) target bundleno = 322 (0x142), region = 40  ;;  %s866_s22 = sand.u32 (!%p795_p3), 1, %s722_s19  }
  0x29   : > { %s469_s6 = sshll.u32 (!%p795_p3), %s866_s22, 3  ;;  %s234_s7 = scalar_lea.sflag (!%p795_p3), [#allocation3], %s866_s22 }
  0x2a   : > { %s237_s13 = scalar_lea.vmem (!%p795_p3), [#allocation2], %s469_s6 }
  0x2d   : > { %705 = dma.done.wait (%p828_p12), %s234_s7, 128  }
  0x2e   : > { %707 = vsyncadd (%p828_p12), %s234_s7, 4294967168 }
  0x2f   : > { %709 = dma.done.wait (%p43_p1), [#allocation6], 512  }
  0x30   : > { %711 = vsyncadd (%p43_p1), [#allocation6], 4294966784  ;;  %v496_v0 = vld [vmem:[#allocation5 + $0x8] sm:$0xff]  ;;  %v276_v1 = vld [vmem:[%s237_s13] sm:$0xff]  ;;  %vm299_vm0 = vcmask 261120   ;;  %s492_s8 = sshll.u32 %s790_s25, 3 }
  0x31   : > { %v277_v2 = vmax.f32 %v276_v1, 0.0  ;;  %309 = vmatpush.bf16.msra.mxu0 %v496_v0  ;;  %v495_v3 = vld [vmem:[#allocation5] sm:$0xff]  ;;  %v498_v5 = vld [vmem:[#allocation7 + $0x8] sm:$0xff]  ;;  %v497_v6 = vld [vmem:[#allocation7] sm:$0xff]  ;;  %s367_s27 = scalar_lea.hbm %s929_s5, %s492_s8  ;;  %s274_s28 = scalar_lea.vmem [#allocation8], %s469_s6 }
  0x32   : > { %347 = vmatpush.bf16.msra.mxu1 %v498_v5  ;;  %v568_v7 = vld [vmem:[%s926_s2] ss:$0 sm:$0xff]  ;;  %s369_s29 = sshll.u32 %s274_s28, 4  ;;  %s371_s30 = sshll.u32 %s367_s27, 4  ;;  %s370_s29 = int_to_ptr.vmem [resolvable:$true] %s369_s29  ;;  %s372_s30 = int_to_ptr.hbm [resolvable:$true] %s371_s30 }
  0x33   : > { %v278_v4 = vpack.c.bf16 %v277_v2, %v277_v2  ;;  %v569_v13 = vld [vmem:[%s928_s4] ss:$0 sm:$0xff]  ;;  %s357_s25 = scalar_lea.sflag [#allocation4], %s866_s22  ;;  %s674_s16 = sshra.s32 %s372_s30, 4  ;;  %s675_s16 = int_to_ptr.hbm [resolvable:$true] %s674_s16 }
  0x34   : > { %s676_s7 = scalar_lea.hbm %s675_s16, 8  ;;  %s680_s6 = scalar_lea.hbm %s929_s5, 16 }
  0x35   : > { %310 = vmatpush.bf16.msra.mxu0 %v495_v3  ;;  %p677_p1 = scmp.ne.s32.totalorder %s675_s16, %s676_s7  ;;  %p681_p12 = scmp.lt.s32.totalorder %s675_s16, %s929_s5 }
  0x36   : > { %348 = vmatpush.bf16.msra.mxu1 %v497_v6  ;;  %p682_p7 = scmp.lt.s32.totalorder %s680_s6, %s676_s7 }
  0x37   : > { %p678_p3 = pnand %p677_p1, %p835_p4 }
  0x38   : > { %481 = vmatmul.msk.bf16.vlgmr.msra.gmra.mxu0 %vm299_vm0, %v278_v4  ;;  %p683_p8 = por %p682_p7, %p681_p12 }
  0x39   : > { %p679_p5 = pneg %p678_p3 }
  0x3b   : > { %p684_p9 = pnand %p683_p8, %p679_p5 }
  0xb5   : > { %v312_v8 = vpop.f32.mrf.mxu0 }
  0xb6   : > { %v313_v9 = vadd.f32 %v568_v7, %v312_v8 }
  0xb8   : > { %v316_v10 = vmax.f32 %v313_v9, 0.0 }
  0xba   : > { %v317_v11 = vpack.c.bf16 %v316_v10, %v316_v10 }
  0xbc   : > { %490 = vmatmul.msk.bf16.vlgmr.msra.gmra.mxu1 %vm299_vm0, %v317_v11 }
  0xbd   : > { %v314_v12 = vpop.f32.mrf.mxu0 }
 0x139   : > { %v350_v14 = vpop.f32.mrf.mxu1 }
 0x13a   : > { %v351_v15 = vadd.f32 %v569_v13, %v350_v14 }
 0x13c   : > { %v354_v16 = vadd.f32 %v351_v15, %v276_v1 }
 0x13e   : > { %355 = vst.msk [vmem:[%s274_s28] sm:$0xff] %vm299_vm0, %v354_v16 }
 0x13f   : > { %687 = shalt.err (!%p684_p9)
}
 0x140   : > { %509 = dma.vmem_to_hbm [thread:$0]  (%p835_p4), %s370_s29, 128, %s372_s30, %s357_s25  }
 0x141   : > { %v352_v17 = vpop.f32.mrf.mxu1 }
 0x142 PF: > { %s383_s22 = sand.u32 1, %s718_s18   ;;  %p936_p10 = scmp.ge.s32.totalorder %s730_s21, 2 }
 0x143   : > { %s384_s9 = scalar_lea.sflag [#allocation4], %s383_s22 }
 0x144   : > { %p523_p13 = pnand %p936_p10, %p839_p6 }
 0x146   : > { %p524_p11 = pneg %p523_p13 }
 0x148   : > { %713 = dma.done.wait (%p524_p11), %s384_s9, 128  }
 0x149   : > { %715 = vsyncadd (%p524_p11), %s384_s9, 4294967168  ;;  %p19_p0 = scmp.ge.s32.totalorder %s809_s12, 4   ;;  %s937_s18 = smov %s722_s19 }
 0x14a   : > { %s938_s19 = smov %s726_s20  ;;  %s939_s20 = smov %s820_s15 }
 0x14b   : > { %s940_s21 = smov %s809_s12  ;;  %21 = sbr.rel (!%p19_p0) target bundleno = 6 (0x6), region = 93 }
 0x150   :  { %390 = vsyncpa [#allocation3], 1 }
 0x151   :  { %392 = vsyncpa [#allocation3 + $0x1], 1 }
 0x152   :  { %393 = vsyncpa [#allocation6], 1 }
 0x153   :  { %394 = vsyncpa [#allocation4], 1 }
 0x154   :  { %396 = vsyncpa [#allocation4 + $0x1], 1 }

</bundles_post_ra>
